<compile_context>
chip_gen: v7x
topology: tpu7x:2x2x1
jax: 0.10.0
libtpu: 0.0.40
codegen_flags: <defaults>
</compile_context>

<pallas_src>
import jax
import jax.numpy as jnp
import numpy as np
from jax.experimental import pallas as pl
from jax.experimental.pallas import tpu as pltpu

H1, H2, H3 = 512, 128, 128          # layer widths inside the kernel (64 padded -> 128)
ACT_VMEM_BUDGET = 40 << 20          # bytes for double-buffered activation tiles
VMEM_LIMIT = 56 << 20               # scoped VMEM limit (v7x physical is 64 MiB)


def _round_up(x, m):
    return -(-x // m) * m


def choose_tiles(B, T, A, V, act_budget_bytes=ACT_VMEM_BUDGET):
    """Pick (TB, TT) so the double-buffered f32 audio+video input slabs fit the VMEM
    budget.  Budget is sized against v7x's 64 MiB physical VMEM; v5e/v6e have 128 MiB."""
    D = A + V
    per_row_t = 2 * D * 4                       # double-buffered audio+video bytes / (row, step)
    # Time tile: full T if an 8-row block fits, else largest multiple of 8 that does.
    if 8 * T * per_row_t <= act_budget_bytes:
        TT = T
    else:
        TT = max(8, min(T, (act_budget_bytes // (8 * per_row_t)) // 8 * 8))
    # Batch tile: largest multiple of 8 (<= 1024 rows) whose (TB, TT, D) slab fits.
    cap = (act_budget_bytes // (TT * per_row_t)) // 8 * 8
    cap = int(max(8, min(cap, 1024)))
    if B <= 8:
        TB = B                                   # single small block (== full batch dim)
    elif B <= cap:
        # ensure >= 2 batch grid steps so v7x's two TensorCores both get work
        TB = min(cap, _round_up(-(-B // 2), 8))
    else:
        TB = cap
    return TB, TT


def make_kernel(total_T, TT):
    needs_t_mask = (total_T % TT) != 0           # last time block overhangs -> mask it
    inv_T = 1.0 / float(total_T)

    def kernel(a_ref, v_ref, w1a_ref, w1b_ref, b1_ref, w2_ref, b2_ref,
               w3_ref, b3_ref, w4_ref, b4_ref, out_ref, acc_a, acc_v):
        t = pl.program_id(1)

        @pl.when(t == 0)
        def _init():
            acc_a[...] = jnp.zeros_like(acc_a)
            acc_v[...] = jnp.zeros_like(acc_v)

        a = a_ref[...]                            # (TB, TT, A) f32
        v = v_ref[...]                            # (TB, TT, V) f32
        if needs_t_mask:
            # Zero out padded time rows of the last (partial) block before accumulating.
            t0 = t * TT
            a_idx = jax.lax.broadcasted_iota(jnp.int32, a.shape, 1) + t0
            v_idx = jax.lax.broadcasted_iota(jnp.int32, v.shape, 1) + t0
            a = jnp.where(a_idx < total_T, a, 0.0)
            v = jnp.where(v_idx < total_T, v, 0.0)

        # Temporal sum accumulated in f32 VMEM scratch (mean's 1/T applied at the end).
        acc_a[...] += jnp.sum(a, axis=1)          # (TB, A)
        acc_v[...] += jnp.sum(v, axis=1)          # (TB, V)

        @pl.when(t == pl.num_programs(1) - 1)
        def _finalize():
            pooled_a = (acc_a[...] * inv_T).astype(jnp.bfloat16)
            pooled_v = (acc_v[...] * inv_T).astype(jnp.bfloat16)
            # Linear(A+V,512) with BN(eval) folded in, split over the two modalities.
            h1 = (jnp.dot(pooled_a, w1a_ref[...], preferred_element_type=jnp.float32)
                  + jnp.dot(pooled_v, w1b_ref[...], preferred_element_type=jnp.float32)
                  + b1_ref[...])
            h1 = jnp.maximum(h1, 0.0)             # ReLU; Dropout = identity (eval)
            emb = jnp.dot(h1.astype(jnp.bfloat16), w2_ref[...],
                          preferred_element_type=jnp.float32) + b2_ref[...]   # (TB,128)
            # outputlayer: Linear(128,64) padded to 128 lanes -> ReLU -> Linear(64,Cpad)
            h3 = jnp.maximum(
                jnp.dot(emb.astype(jnp.bfloat16), w3_ref[...],
                        preferred_element_type=jnp.float32) + b3_ref[...], 0.0)
            out_ref[...] = (jnp.dot(h3.astype(jnp.bfloat16), w4_ref[...],
                                    preferred_element_type=jnp.float32) + b4_ref[...])

    return kernel


def prepare_params(params, audio_dim):
    """Host-side constant folding, done ONCE (not per forward call):
    eval-mode BN folded into W1/b1, W1 split by modality, 64-wide hidden and the
    classifier zero-padded to full 128-lane widths, matmul weights cast to bf16."""
    bn_scale = params["bn_gamma"] / jnp.sqrt(params["bn_var"] + params["bn_eps"])   # (512,)
    bn_shift = params["bn_beta"] - params["bn_mean"] * bn_scale
    w1 = params["w1"] * bn_scale[None, :]
    b1 = params["b1"] * bn_scale + bn_shift
    w1a, w1b = w1[:audio_dim], w1[audio_dim:]

    C = params["w4"].shape[1]
    out_pad = _round_up(C, 128)
    w3p = jnp.zeros((H2, H3), jnp.float32).at[:, :64].set(params["w3"])
    b3p = jnp.zeros((H3,), jnp.float32).at[:64].set(params["b3"])
    w4p = jnp.zeros((H3, out_pad), jnp.float32).at[:64, :C].set(params["w4"])
    b4p = jnp.zeros((out_pad,), jnp.float32).at[:C].set(params["b4"])

    bf16 = jnp.bfloat16
    return {
        "w1a": w1a.astype(bf16), "w1b": w1b.astype(bf16), "b1": b1.reshape(1, -1),
        "w2": params["w2"].astype(bf16), "b2": params["b2"].reshape(1, -1),
        "w3": w3p.astype(bf16), "b3": b3p.reshape(1, -1),
        "w4": w4p.astype(bf16), "b4": b4p.reshape(1, -1),
        "num_classes": C, "out_pad": out_pad,
    }


def early_fusion_forward(audio_feat, video_feat, folded):
    B, T, A = audio_feat.shape
    V = video_feat.shape[2]
    out_pad = folded["out_pad"]

    TB, TT = choose_tiles(B, T, A, V)
    grid = (pl.cdiv(B, TB), pl.cdiv(T, TT))
    const = lambda i, t: (0, 0)          # weights/biases: DMA'd once, VMEM-resident

    # NOTE: if B % TB != 0, the overhanging rows of the last batch block hold
    # unspecified padded data; their garbage results are discarded by the masked
    # output writeback, so this is safe by construction.
    out = pl.pallas_call(
        make_kernel(T, TT),
        out_shape=jax.ShapeDtypeStruct((B, out_pad), jnp.float32),
        grid=grid,
        in_specs=[
            pl.BlockSpec((TB, TT, A), lambda i, t: (i, t, 0)),    # audio activations
            pl.BlockSpec((TB, TT, V), lambda i, t: (i, t, 0)),    # video activations
            pl.BlockSpec((A, H1), const), pl.BlockSpec((V, H1), const),
            pl.BlockSpec((1, H1), const),
            pl.BlockSpec((H1, 128), const), pl.BlockSpec((1, 128), const),
            pl.BlockSpec((H2, H3), const), pl.BlockSpec((1, H3), const),
            pl.BlockSpec((H3, out_pad), const), pl.BlockSpec((1, out_pad), const),
        ],
        out_specs=pl.BlockSpec((TB, out_pad), lambda i, t: (i, 0)),
        scratch_shapes=[pltpu.VMEM((TB, A), jnp.float32),
                        pltpu.VMEM((TB, V), jnp.float32)],
        compiler_params=pltpu.CompilerParams(
            dimension_semantics=("parallel", "arbitrary"),
            vmem_limit_bytes=VMEM_LIMIT),
    )(audio_feat, video_feat,
      folded["w1a"], folded["w1b"], folded["b1"],
      folded["w2"], folded["b2"], folded["w3"], folded["b3"],
      folded["w4"], folded["b4"])

    return out[:, :folded["num_classes"]]


def init_params(key, audio_dim, video_dim, num_classes):
    """PyTorch-style init (uniform +/- 1/sqrt(fan_in)); BatchNorm1d at eval defaults."""
    def linear(key, fan_in, fan_out):
        kw, kb = jax.random.split(key)
        bound = 1.0 / np.sqrt(fan_in)
        w = jax.random.uniform(kw, (fan_in, fan_out), jnp.float32, -bound, bound)
        b = jax.random.uniform(kb, (fan_out,), jnp.float32, -bound, bound)
        return w, b

    k1, k2, k3, k4 = jax.random.split(key, 4)
    w1, b1 = linear(k1, audio_dim + video_dim, 512)
    w2, b2 = linear(k2, 512, 128)
    w3, b3 = linear(k3, 128, 64)
    w4, b4 = linear(k4, 64, num_classes)
    return {
        "w1": w1, "b1": b1,
        "bn_gamma": jnp.ones((512,), jnp.float32),
        "bn_beta": jnp.zeros((512,), jnp.float32),
        "bn_mean": jnp.zeros((512,), jnp.float32),
        "bn_var": jnp.ones((512,), jnp.float32),
        "bn_eps": 1e-5,
        "w2": w2, "b2": b2, "w3": w3, "b3": b3, "w4": w4, "b4": b4,
    }


def reference_forward(audio_feat, video_feat, params):
    """Pure-JAX f32 reference mirroring the PyTorch forward (eval mode)."""
    combined = jnp.concatenate([audio_feat, video_feat], axis=2)
    x = combined.mean(axis=1)
    h = x @ params["w1"] + params["b1"]
    s = params["bn_gamma"] / jnp.sqrt(params["bn_var"] + params["bn_eps"])
    h = (h - params["bn_mean"]) * s + params["bn_beta"]
    h = jnp.maximum(h, 0.0)
    emb = h @ params["w2"] + params["b2"]
    h = jnp.maximum(emb @ params["w3"] + params["b3"], 0.0)
    return h @ params["w4"] + params["b4"]


if __name__ == "__main__":
    B, T = 4, 8
    audio_dim, video_dim, num_classes = 32, 32, 10

    key = jax.random.PRNGKey(0)
    k_a, k_v, k_p = jax.random.split(key, 3)
    audio_feat = jax.random.normal(k_a, (B, T, audio_dim), jnp.float32)
    video_feat = jax.random.normal(k_v, (B, T, video_dim), jnp.float32)
    params = init_params(k_p, audio_dim, video_dim, num_classes)

    folded = prepare_params(params, audio_dim)    # host-side folding, done once
    out = jax.block_until_ready(early_fusion_forward(audio_feat, video_feat, folded))
    assert out.shape == (B, num_classes)

    ref = reference_forward(audio_feat, video_feat, params)
    # Tolerance loosened vs. pure-f32 because MXU operands are cast to bfloat16.
    np.testing.assert_allclose(np.asarray(out), np.asarray(ref), rtol=3e-2, atol=3e-2)

    print("KERNEL_OK")
</pallas_src>

<mosaic_0001>
module attributes {stable_mosaic.version = 11 : i64} {
  func.func @kernel(%arg0: i32, %arg1: i32, %arg2: memref<4x8x32xf32, #tpu.memory_space<vmem>>, %arg3: memref<4x8x32xf32, #tpu.memory_space<vmem>>, %arg4: memref<32x512xbf16, #tpu.memory_space<vmem>>, %arg5: memref<32x512xbf16, #tpu.memory_space<vmem>>, %arg6: memref<1x512xf32, #tpu.memory_space<vmem>>, %arg7: memref<512x128xbf16, #tpu.memory_space<vmem>>, %arg8: memref<1x128xf32, #tpu.memory_space<vmem>>, %arg9: memref<128x128xbf16, #tpu.memory_space<vmem>>, %arg10: memref<1x128xf32, #tpu.memory_space<vmem>>, %arg11: memref<128x128xbf16, #tpu.memory_space<vmem>>, %arg12: memref<1x128xf32, #tpu.memory_space<vmem>>, %arg13: memref<4x128xf32, #tpu.memory_space<vmem>>, %arg14: memref<4x32xf32, #tpu.memory_space<vmem>>, %arg15: memref<4x32xf32, #tpu.memory_space<vmem>>) attributes {dimension_semantics = [#tpu.dimension_semantics<parallel>, #tpu.dimension_semantics<arbitrary>], iteration_bounds = array<i64: 1, 1>, scalar_prefetch = 0 : i64, scratch_operands = 2 : i64, tpu.core_type = #tpu.core_type<tc>, window_params = [{transform_indices = @transform_0, window_bounds = array<i64: 4, 8, 32>}, {transform_indices = @transform_1, window_bounds = array<i64: 4, 8, 32>}, {pipeline_mode = #tpu.pipeline_mode<synchronous>, transform_indices = @transform_2, window_bounds = array<i64: 32, 512>}, {pipeline_mode = #tpu.pipeline_mode<synchronous>, transform_indices = @transform_3, window_bounds = array<i64: 32, 512>}, {pipeline_mode = #tpu.pipeline_mode<synchronous>, transform_indices = @transform_4, window_bounds = array<i64: 1, 512>}, {pipeline_mode = #tpu.pipeline_mode<synchronous>, transform_indices = @transform_5, window_bounds = array<i64: 512, 128>}, {pipeline_mode = #tpu.pipeline_mode<synchronous>, transform_indices = @transform_6, window_bounds = array<i64: 1, 128>}, {pipeline_mode = #tpu.pipeline_mode<synchronous>, transform_indices = @transform_7, window_bounds = array<i64: 128, 128>}, {pipeline_mode = #tpu.pipeline_mode<synchronous>, transform_indices = @transform_8, window_bounds = array<i64: 1, 128>}, {pipeline_mode = #tpu.pipeline_mode<synchronous>, transform_indices = @transform_9, window_bounds = array<i64: 128, 128>}, {pipeline_mode = #tpu.pipeline_mode<synchronous>, transform_indices = @transform_10, window_bounds = array<i64: 1, 128>}, {transform_indices = @transform_11, window_bounds = array<i64: 4, 128>}]} {
    %c0_i32 = arith.constant 0 : i32
    %0 = arith.cmpi eq, %arg1, %c0_i32 : i32
    %1 = arith.extui %0 : i1 to i32
    %c0_i32_0 = arith.constant 0 : i32
    %2 = arith.cmpi ne, %1, %c0_i32_0 : i32
    scf.if %2 {
      %cst_17 = arith.constant 0.000000e+00 : f32
      %16 = vector.broadcast %cst_17 : f32 to vector<4x32xf32>
      %c0_18 = arith.constant 0 : index
      %c0_19 = arith.constant 0 : index
      %17 = vector.load %arg14[%c0_18, %c0_19] : memref<4x32xf32, #tpu.memory_space<vmem>>, vector<4x32xf32>
      tpu.vector_store %arg14[%c0_18, %c0_19], %16 {strides = array<i32>} : memref<4x32xf32, #tpu.memory_space<vmem>>, vector<4x32xf32>,
      %cst_20 = arith.constant 0.000000e+00 : f32
      %18 = vector.broadcast %cst_20 : f32 to vector<4x32xf32>
      %c0_21 = arith.constant 0 : index
      %c0_22 = arith.constant 0 : index
      %19 = vector.load %arg15[%c0_21, %c0_22] : memref<4x32xf32, #tpu.memory_space<vmem>>, vector<4x32xf32>
      tpu.vector_store %arg15[%c0_21, %c0_22], %18 {strides = array<i32>} : memref<4x32xf32, #tpu.memory_space<vmem>>, vector<4x32xf32>,
    } else {
    }
    %c0 = arith.constant 0 : index
    %c0_1 = arith.constant 0 : index
    %c0_2 = arith.constant 0 : index
    %3 = vector.load %arg2[%c0, %c0_1, %c0_2] : memref<4x8x32xf32, #tpu.memory_space<vmem>>, vector<4x8x32xf32>
    %c0_3 = arith.constant 0 : index
    %c0_4 = arith.constant 0 : index
    %c0_5 = arith.constant 0 : index
    %4 = vector.load %arg3[%c0_3, %c0_4, %c0_5] : memref<4x8x32xf32, #tpu.memory_space<vmem>>, vector<4x8x32xf32>
    %c0_6 = arith.constant 0 : index
    %c0_7 = arith.constant 0 : index
    %5 = vector.load %arg14[%c0_6, %c0_7] : memref<4x32xf32, #tpu.memory_space<vmem>>, vector<4x32xf32>
    %cst = arith.constant dense<0.000000e+00> : vector<4x32xf32>
    %6 = vector.multi_reduction <add>, %3, %cst [1] : vector<4x8x32xf32> to vector<4x32xf32>
    %7 = arith.addf %5, %6 : vector<4x32xf32>
    %c0_8 = arith.constant 0 : index
    %c0_9 = arith.constant 0 : index
    %8 = vector.load %arg14[%c0_8, %c0_9] : memref<4x32xf32, #tpu.memory_space<vmem>>, vector<4x32xf32>
    tpu.vector_store %arg14[%c0_8, %c0_9], %7 {strides = array<i32>} : memref<4x32xf32, #tpu.memory_space<vmem>>, vector<4x32xf32>,
    %c0_10 = arith.constant 0 : index
    %c0_11 = arith.constant 0 : index
    %9 = vector.load %arg15[%c0_10, %c0_11] : memref<4x32xf32, #tpu.memory_space<vmem>>, vector<4x32xf32>
    %cst_12 = arith.constant dense<0.000000e+00> : vector<4x32xf32>
    %10 = vector.multi_reduction <add>, %4, %cst_12 [1] : vector<4x8x32xf32> to vector<4x32xf32>
    %11 = arith.addf %9, %10 : vector<4x32xf32>
    %c0_13 = arith.constant 0 : index
    %c0_14 = arith.constant 0 : index
    %12 = vector.load %arg15[%c0_13, %c0_14] : memref<4x32xf32, #tpu.memory_space<vmem>>, vector<4x32xf32>
    tpu.vector_store %arg15[%c0_13, %c0_14], %11 {strides = array<i32>} : memref<4x32xf32, #tpu.memory_space<vmem>>, vector<4x32xf32>,
    %c0_i32_15 = arith.constant 0 : i32
    %13 = arith.cmpi eq, %arg1, %c0_i32_15 : i32
    %14 = arith.extui %13 : i1 to i32
    %c0_i32_16 = arith.constant 0 : i32
    %15 = arith.cmpi ne, %14, %c0_i32_16 : i32
    scf.if %15 {
      %c0_17 = arith.constant 0 : index
      %c0_18 = arith.constant 0 : index
      %16 = vector.load %arg14[%c0_17, %c0_18] : memref<4x32xf32, #tpu.memory_space<vmem>>, vector<4x32xf32>
      %cst_19 = arith.constant 1.250000e-01 : f32
      %17 = vector.broadcast %cst_19 : f32 to vector<4x32xf32>
      %18 = arith.mulf %16, %17 : vector<4x32xf32>
      %19 = arith.truncf %18 : vector<4x32xf32> to vector<4x32xbf16>
      %c0_20 = arith.constant 0 : index
      %c0_21 = arith.constant 0 : index
      %20 = vector.load %arg15[%c0_20, %c0_21] : memref<4x32xf32, #tpu.memory_space<vmem>>, vector<4x32xf32>
      %cst_22 = arith.constant 1.250000e-01 : f32
      %21 = vector.broadcast %cst_22 : f32 to vector<4x32xf32>
      %22 = arith.mulf %20, %21 : vector<4x32xf32>
      %23 = arith.truncf %22 : vector<4x32xf32> to vector<4x32xbf16>
      %c0_23 = arith.constant 0 : index
      %c0_24 = arith.constant 0 : index
      %24 = vector.load %arg4[%c0_23, %c0_24] : memref<32x512xbf16, #tpu.memory_space<vmem>>, vector<32x512xbf16>
      %cst_25 = arith.constant dense<0.000000e+00> : vector<4x512xf32>
      %25 = tpu.matmul %19, %24, %cst_25 {dimension_numbers = #tpu.dot_dimension_numbers<[1], [0], [0], [1], [0, 0, 1, 1], [], []>} : vector<4x32xbf16>, vector<32x512xbf16>, vector<4x512xf32> -> vector<4x512xf32>
      %c0_26 = arith.constant 0 : index
      %c0_27 = arith.constant 0 : index
      %26 = vector.load %arg5[%c0_26, %c0_27] : memref<32x512xbf16, #tpu.memory_space<vmem>>, vector<32x512xbf16>
      %cst_28 = arith.constant dense<0.000000e+00> : vector<4x512xf32>
      %27 = tpu.matmul %23, %26, %cst_28 {dimension_numbers = #tpu.dot_dimension_numbers<[1], [0], [0], [1], [0, 0, 1, 1], [], []>} : vector<4x32xbf16>, vector<32x512xbf16>, vector<4x512xf32> -> vector<4x512xf32>
      %28 = arith.addf %25, %27 : vector<4x512xf32>
      %c0_29 = arith.constant 0 : index
      %c0_30 = arith.constant 0 : index
      %29 = vector.load %arg6[%c0_29, %c0_30] : memref<1x512xf32, #tpu.memory_space<vmem>>, vector<1x512xf32>
      %30 = vector.broadcast %29 : vector<1x512xf32> to vector<4x512xf32>
      %31 = arith.addf %28, %30 : vector<4x512xf32>
      %cst_31 = arith.constant 0.000000e+00 : f32
      %32 = vector.broadcast %cst_31 : f32 to vector<4x512xf32>
      %33 = arith.maximumf %31, %32 : vector<4x512xf32>
      %34 = arith.truncf %33 : vector<4x512xf32> to vector<4x512xbf16>
      %c0_32 = arith.constant 0 : index
      %c0_33 = arith.constant 0 : index
      %35 = vector.load %arg7[%c0_32, %c0_33] : memref<512x128xbf16, #tpu.memory_space<vmem>>, vector<512x128xbf16>
      %cst_34 = arith.constant dense<0.000000e+00> : vector<4x128xf32>
      %36 = tpu.matmul %34, %35, %cst_34 {dimension_numbers = #tpu.dot_dimension_numbers<[1], [0], [0], [1], [0, 0, 1, 1], [], []>} : vector<4x512xbf16>, vector<512x128xbf16>, vector<4x128xf32> -> vector<4x128xf32>
      %c0_35 = arith.constant 0 : index
      %c0_36 = arith.constant 0 : index
      %37 = vector.load %arg8[%c0_35, %c0_36] : memref<1x128xf32, #tpu.memory_space<vmem>>, vector<1x128xf32>
      %38 = vector.broadcast %37 : vector<1x128xf32> to vector<4x128xf32>
      %39 = arith.addf %36, %38 : vector<4x128xf32>
      %40 = arith.truncf %39 : vector<4x128xf32> to vector<4x128xbf16>
      %c0_37 = arith.constant 0 : index
      %c0_38 = arith.constant 0 : index
      %41 = vector.load %arg9[%c0_37, %c0_38] : memref<128x128xbf16, #tpu.memory_space<vmem>>, vector<128x128xbf16>
      %cst_39 = arith.constant dense<0.000000e+00> : vector<4x128xf32>
      %42 = tpu.matmul %40, %41, %cst_39 {dimension_numbers = #tpu.dot_dimension_numbers<[1], [0], [0], [1], [0, 0, 1, 1], [], []>} : vector<4x128xbf16>, vector<128x128xbf16>, vector<4x128xf32> -> vector<4x128xf32>
      %c0_40 = arith.constant 0 : index
      %c0_41 = arith.constant 0 : index
      %43 = vector.load %arg10[%c0_40, %c0_41] : memref<1x128xf32, #tpu.memory_space<vmem>>, vector<1x128xf32>
      %44 = vector.broadcast %43 : vector<1x128xf32> to vector<4x128xf32>
      %45 = arith.addf %42, %44 : vector<4x128xf32>
      %cst_42 = arith.constant 0.000000e+00 : f32
      %46 = vector.broadcast %cst_42 : f32 to vector<4x128xf32>
      %47 = arith.maximumf %45, %46 : vector<4x128xf32>
      %48 = arith.truncf %47 : vector<4x128xf32> to vector<4x128xbf16>
      %c0_43 = arith.constant 0 : index
      %c0_44 = arith.constant 0 : index
      %49 = vector.load %arg11[%c0_43, %c0_44] : memref<128x128xbf16, #tpu.memory_space<vmem>>, vector<128x128xbf16>
      %cst_45 = arith.constant dense<0.000000e+00> : vector<4x128xf32>
      %50 = tpu.matmul %48, %49, %cst_45 {dimension_numbers = #tpu.dot_dimension_numbers<[1], [0], [0], [1], [0, 0, 1, 1], [], []>} : vector<4x128xbf16>, vector<128x128xbf16>, vector<4x128xf32> -> vector<4x128xf32>
      %c0_46 = arith.constant 0 : index
      %c0_47 = arith.constant 0 : index
      %51 = vector.load %arg12[%c0_46, %c0_47] : memref<1x128xf32, #tpu.memory_space<vmem>>, vector<1x128xf32>
      %52 = vector.broadcast %51 : vector<1x128xf32> to vector<4x128xf32>
      %53 = arith.addf %50, %52 : vector<4x128xf32>
      %c0_48 = arith.constant 0 : index
      %c0_49 = arith.constant 0 : index
      %54 = vector.load %arg13[%c0_48, %c0_49] : memref<4x128xf32, #tpu.memory_space<vmem>>, vector<4x128xf32>
      tpu.vector_store %arg13[%c0_48, %c0_49], %53 {strides = array<i32>} : memref<4x128xf32, #tpu.memory_space<vmem>>, vector<4x128xf32>,
    } else {
    }
    return
  }
  func.func @transform_0(%arg0: i32, %arg1: i32) -> (i32, i32, i32) {
    %c0_i32 = arith.constant 0 : i32
    %c0_i32_0 = arith.constant 0 : i32
    return %arg0, %arg1, %c0_i32 : i32, i32, i32
  }
  func.func @transform_1(%arg0: i32, %arg1: i32) -> (i32, i32, i32) {
    %c0_i32 = arith.constant 0 : i32
    %c0_i32_0 = arith.constant 0 : i32
    return %arg0, %arg1, %c0_i32 : i32, i32, i32
  }
  func.func @transform_2(%arg0: i32, %arg1: i32) -> (i32, i32) {
    %c0_i32 = arith.constant 0 : i32
    %c0_i32_0 = arith.constant 0 : i32
    %c0_i32_1 = arith.constant 0 : i32
    return %c0_i32, %c0_i32_0 : i32, i32
  }
  func.func @transform_3(%arg0: i32, %arg1: i32) -> (i32, i32) {
    %c0_i32 = arith.constant 0 : i32
    %c0_i32_0 = arith.constant 0 : i32
    %c0_i32_1 = arith.constant 0 : i32
    return %c0_i32, %c0_i32_0 : i32, i32
  }
  func.func @transform_4(%arg0: i32, %arg1: i32) -> (i32, i32) {
    %c0_i32 = arith.constant 0 : i32
    %c0_i32_0 = arith.constant 0 : i32
    %c0_i32_1 = arith.constant 0 : i32
    return %c0_i32, %c0_i32_0 : i32, i32
  }
  func.func @transform_5(%arg0: i32, %arg1: i32) -> (i32, i32) {
    %c0_i32 = arith.constant 0 : i32
    %c0_i32_0 = arith.constant 0 : i32
    %c0_i32_1 = arith.constant 0 : i32
    return %c0_i32, %c0_i32_0 : i32, i32
  }
  func.func @transform_6(%arg0: i32, %arg1: i32) -> (i32, i32) {
    %c0_i32 = arith.constant 0 : i32
    %c0_i32_0 = arith.constant 0 : i32
    %c0_i32_1 = arith.constant 0 : i32
    return %c0_i32, %c0_i32_0 : i32, i32
  }
  func.func @transform_7(%arg0: i32, %arg1: i32) -> (i32, i32) {
    %c0_i32 = arith.constant 0 : i32
    %c0_i32_0 = arith.constant 0 : i32
    %c0_i32_1 = arith.constant 0 : i32
    return %c0_i32, %c0_i32_0 : i32, i32
  }
  func.func @transform_8(%arg0: i32, %arg1: i32) -> (i32, i32) {
    %c0_i32 = arith.constant 0 : i32
    %c0_i32_0 = arith.constant 0 : i32
    %c0_i32_1 = arith.constant 0 : i32
    return %c0_i32, %c0_i32_0 : i32, i32
  }
  func.func @transform_9(%arg0: i32, %arg1: i32) -> (i32, i32) {
    %c0_i32 = arith.constant 0 : i32
    %c0_i32_0 = arith.constant 0 : i32
    %c0_i32_1 = arith.constant 0 : i32
    return %c0_i32, %c0_i32_0 : i32, i32
  }
  func.func @transform_10(%arg0: i32, %arg1: i32) -> (i32, i32) {
    %c0_i32 = arith.constant 0 : i32
    %c0_i32_0 = arith.constant 0 : i32
    %c0_i32_1 = arith.constant 0 : i32
    return %c0_i32, %c0_i32_0 : i32, i32
  }
  func.func @transform_11(%arg0: i32, %arg1: i32) -> (i32, i32) {
    %c0_i32 = arith.constant 0 : i32
    %c0_i32_0 = arith.constant 0 : i32
    return %arg0, %c0_i32 : i32, i32
  }
}

</mosaic_0001>

<bundles_post_ra>
// kernel: tpu_custom_call.1
= control target key start
LH: loop header
LB: loop body
LE: loop exit
PB: predicated region body
PF: predicated region fallthrough
CT: control target
= control target key end

     0   :  { %16 = vsyncpa [#allocation5], 0  ;;  %s1843_s0 = inlined_call_operand.hbm [shape: f32[4,8,32], index: 0, kind: input, shape index: {}]   ;;  %s1844_s1 = inlined_call_operand.hbm [shape: f32[4,8,32], index: 1, kind: input, shape index: {}]   ;;  %s1845_s2 = inlined_call_operand.hbm [shape: bf16[32,512], index: 2, kind: input, shape index: {}]   ;;  %s1846_s3 = inlined_call_operand.hbm [shape: bf16[32,512], index: 3, kind: input, shape index: {}]   ;;  %s1847_s4 = inlined_call_operand.vmem [shape: f32[1,512], index: 4, kind: input, shape index: {}]   ;;  %s1848_s5 = inlined_call_operand.hbm [shape: bf16[512,128], index: 5, kind: input, shape index: {}]   ;;  %s1849_s6 = inlined_call_operand.vmem [shape: f32[1,128], index: 6, kind: input, shape index: {}]   ;;  %s1850_s7 = inlined_call_operand.hbm [shape: bf16[128,128], index: 7, kind: input, shape index: {}]   ;;  %s1851_s8 = inlined_call_operand.vmem [shape: f32[1,128], index: 8, kind: input, shape index: {}]   ;;  %s1852_s9 = inlined_call_operand.hbm [shape: bf16[128,128], index: 9, kind: input, shape index: {}]   ;;  %s1853_s10 = inlined_call_operand.vmem [shape: f32[1,128], index: 10, kind: input, shape index: {}]   ;;  %s1854_s11 = inlined_call_operand.hbm [shape: f32[4,128], index: 11, kind: output, shape index: {}]  }
   0x1   :  { %17 = vsyncpa [#allocation8], 0 }
   0x2   :  { %18 = vsyncpa [#allocation11], 0 }
   0x3   :  { %19 = vsyncpa [#allocation14], 0 }
   0x4   :  { %20 = vsyncpa [#allocation6], 0  ;;  %s1577_s17 = smov [#allocation7]   ;;  %s1391_s21 = scalar_lea.hbm %s1844_s1, 512 }
   0x5   :  { %s38_s18 = sshll.u32 %s1577_s17, 4  ;;  %p1392_p0 = scmp.ne.s32.totalorder %s1844_s1, %s1391_s21  ;;  %s39_s18 = int_to_ptr.vmem [resolvable:$true] %s38_s18 }
   0x6   :  { %p1395_p1 = scmp.lt.u32.totalorder %s1391_s21, %s1844_s1 }
   0x8   :  { %p1397_p2 = pnand %p1395_p1, %p1392_p0 }
   0xa   :  { %1400 = shalt.err (!%p1397_p2)
}
   0xb   :  { %s1401_s26 = scalar_lea.vmem %s39_s18, 512  ;;  %p1406_p4 = scmp.lt.s32.totalorder %s39_s18, %s39_s18 }
   0xc   :  { %p1402_p3 = scmp.ne.s32.totalorder %s39_s18, %s1401_s26  ;;  %p1407_p5 = scmp.lt.s32.totalorder %s1401_s26, %s1401_s26 }
   0xe   :  { %p1408_p6 = por %p1407_p5, %p1406_p4 }
  0x10   :  { %p1409_p7 = pnand %p1408_p6, %p1402_p3 }
  0x12   :  { %1412 = shalt.err (!%p1409_p7)
}
  0x13   :  { %s1578_s27 = smov 128   ;;  %s1579_s28 = smov 8  }
  0x14   :  { %44 = dma.hbm_to_vmem [thread:$0]  %s1844_s1, 512, %s39_s18, [#allocation8], %s1578_s27, %s1578_s27, %s1579_s28  }
  0x15   :  { %s1580_s12 = smov [#allocation10]   ;;  %s1413_s16 = scalar_lea.hbm %s1846_s3, 1024 }
  0x16   :  { %s62_s13 = sshll.u32 %s1580_s12, 4  ;;  %p1414_p8 = scmp.ne.s32.totalorder %s1846_s3, %s1413_s16  ;;  %s63_s13 = int_to_ptr.vmem [resolvable:$true] %s62_s13 }
  0x17   :  { %p1417_p9 = scmp.lt.u32.totalorder %s1413_s16, %s1846_s3 }
  0x19   :  { %p1419_p10 = pnand %p1417_p9, %p1414_p8 }
  0x1b   :  { %1422 = shalt.err (!%p1419_p10)
}
  0x1c   :  { %s1423_s22 = scalar_lea.vmem %s63_s13, 1024  ;;  %p1428_p12 = scmp.lt.s32.totalorder %s63_s13, %s63_s13 }
  0x1d   :  { %p1424_p11 = scmp.ne.s32.totalorder %s63_s13, %s1423_s22  ;;  %p1429_p13 = scmp.lt.s32.totalorder %s1423_s22, %s1423_s22 }
  0x1f   :  { %p1430_p0 = por %p1429_p13, %p1428_p12 }
  0x21   :  { %p1431_p1 = pnand %p1430_p0, %p1424_p11 }
  0x23   :  { %1434 = shalt.err (!%p1431_p1)
}
  0x24   :  { %s1581_s1 = smov 256   ;;  %s1582_s18 = smov 16  }
  0x25   :  { %68 = dma.hbm_to_vmem [thread:$0]  %s1846_s3, 1024, %s63_s13, [#allocation11], %s1581_s1, %s1581_s1, %s1582_s18  }
  0x26   :  { %s1583_s25 = smov [#allocation13]   ;;  %s1584_s29 = smov [#allocation4]  }
  0x27   :  { %s90_s26 = sshll.u32 %s1583_s25, 4  ;;  %s26_s30 = sshll.u32 %s1584_s29, 4  ;;  %s91_s26 = int_to_ptr.vmem [resolvable:$true] %s90_s26  ;;  %s1684_s30 = int_to_ptr.vmem [resolvable:$true] %s26_s30 }
  0x28   :  { %s1435_s15 = scalar_lea.hbm %s1850_s7, 1024 }
  0x29   :  { %p1436_p2 = scmp.ne.s32.totalorder %s1850_s7, %s1435_s15  ;;  %p1439_p3 = scmp.lt.u32.totalorder %s1435_s15, %s1850_s7 }
  0x2b   :  { %p1441_p4 = pnand %p1439_p3, %p1436_p2 }
  0x2d   :  { %1444 = shalt.err (!%p1441_p4)
}
  0x2e   :  { %s1445_s3 = scalar_lea.vmem %s91_s26, 1024  ;;  %p1450_p6 = scmp.lt.s32.totalorder %s91_s26, %s91_s26 }
  0x2f   :  { %p1446_p5 = scmp.ne.s32.totalorder %s91_s26, %s1445_s3  ;;  %p1451_p7 = scmp.lt.s32.totalorder %s1445_s3, %s1445_s3 }
  0x31   :  { %p1452_p8 = por %p1451_p7, %p1450_p6 }
  0x33   :  { %p1453_p9 = pnand %p1452_p8, %p1446_p5 }
  0x35   :  { %1456 = shalt.err (!%p1453_p9)
}
  0x36   :  { %s1585_s13 = smov 64   ;;  %s1586_s21 = smov 4  }
  0x37   :  { %96 = dma.hbm_to_vmem [thread:$0]  %s1850_s7, 1024, %s91_s26, [#allocation14], %s1585_s13, %s1585_s13, %s1586_s21  }
  0x38   :  { %s1457_s29 = scalar_lea.hbm %s1843_s0, 512 }
  0x39   :  { %p1458_p10 = scmp.ne.s32.totalorder %s1843_s0, %s1457_s29  ;;  %p1461_p11 = scmp.lt.u32.totalorder %s1457_s29, %s1843_s0 }
  0x3b   :  { %p1463_p12 = pnand %p1461_p11, %p1458_p10 }
  0x3d   :  { %1466 = shalt.err (!%p1463_p12)
}
  0x3e   :  { %s1467_s17 = scalar_lea.vmem %s1684_s30, 512  ;;  %p1472_p0 = scmp.lt.s32.totalorder %s1684_s30, %s1684_s30 }
  0x3f   :  { %p1468_p13 = scmp.ne.s32.totalorder %s1684_s30, %s1467_s17  ;;  %p1473_p1 = scmp.lt.s32.totalorder %s1467_s17, %s1467_s17 }
  0x41   :  { %p1474_p2 = por %p1473_p1, %p1472_p0 }
  0x43   :  { %p1475_p3 = pnand %p1474_p2, %p1468_p13 }
  0x45   :  { %1478 = shalt.err (!%p1475_p3)
}
  0x46   :  { %32 = dma.hbm_to_vmem [thread:$0]  %s1843_s0, 512, %s1684_s30, [#allocation5], %s1578_s27, %s1578_s27, %s1579_s28  }
  0x47   :  { %s1587_s19 = smov [#allocation9]   ;;  %s1588_s3 = smov [#allocation12]  }
  0x48   :  { %s50_s20 = sshll.u32 %s1587_s19, 4  ;;  %s76_s22 = sshll.u32 %s1588_s3, 4  ;;  %s51_s20 = int_to_ptr.vmem [resolvable:$true] %s50_s20  ;;  %s1721_s22 = int_to_ptr.vmem [resolvable:$true] %s76_s22 }
  0x49   :  { %s1479_s25 = scalar_lea.hbm %s1845_s2, 1024 }
  0x4a   :  { %p1480_p4 = scmp.ne.s32.totalorder %s1845_s2, %s1479_s25  ;;  %p1483_p5 = scmp.lt.u32.totalorder %s1479_s25, %s1845_s2 }
  0x4c   :  { %p1485_p6 = pnand %p1483_p5, %p1480_p4 }
  0x4e   :  { %1488 = shalt.err (!%p1485_p6)
}
  0x4f   :  { %s1489_s0 = scalar_lea.vmem %s51_s20, 1024  ;;  %p1494_p8 = scmp.lt.s32.totalorder %s51_s20, %s51_s20 }
  0x50   :  { %p1490_p7 = scmp.ne.s32.totalorder %s51_s20, %s1489_s0  ;;  %p1495_p9 = scmp.lt.s32.totalorder %s1489_s0, %s1489_s0 }
  0x52   :  { %p1496_p10 = por %p1495_p9, %p1494_p8 }
  0x54   :  { %p1497_p11 = pnand %p1496_p10, %p1490_p7 }
  0x56   :  { %1500 = shalt.err (!%p1497_p11)
}
  0x57   :  { %56 = dma.hbm_to_vmem [thread:$0]  %s1845_s2, 1024, %s51_s20, [#allocation8], %s1581_s1, %s1581_s1, %s1582_s18  }
  0x58   :  { %s1501_s17 = scalar_lea.hbm %s1848_s5, 4096 }
  0x59   :  { %p1502_p12 = scmp.ne.s32.totalorder %s1848_s5, %s1501_s17  ;;  %p1505_p13 = scmp.lt.u32.totalorder %s1501_s17, %s1848_s5 }
  0x5b   :  { %p1507_p0 = pnand %p1505_p13, %p1502_p12 }
  0x5d   :  { %1510 = shalt.err (!%p1507_p0)
}
  0x5e   :  { %s1511_s23 = scalar_lea.vmem %s1721_s22, 4096  ;;  %p1516_p2 = scmp.lt.s32.totalorder %s1721_s22, %s1721_s22 }
  0x5f   :  { %p1512_p1 = scmp.ne.s32.totalorder %s1721_s22, %s1511_s23  ;;  %p1517_p3 = scmp.lt.s32.totalorder %s1511_s23, %s1511_s23 }
  0x61   :  { %p1518_p4 = por %p1517_p3, %p1516_p2 }
  0x63   :  { %p1519_p5 = pnand %p1518_p4, %p1512_p1 }
  0x65   :  { %1522 = shalt.err (!%p1519_p5)
}
  0x66   :  { %82 = dma.hbm_to_vmem [thread:$0]  %s1848_s5, 4096, %s1721_s22, [#allocation11], %s1585_s13, %s1585_s13, %s1586_s21  }
  0x67   :  { %s1589_s18 = smov [#allocation15]   ;;  %s1523_s29 = scalar_lea.hbm %s1852_s9, 1024 }
  0x68   :  { %s104_s20 = sshll.u32 %s1589_s18, 4  ;;  %p1524_p6 = scmp.ne.s32.totalorder %s1852_s9, %s1523_s29  ;;  %s105_s20 = int_to_ptr.vmem [resolvable:$true] %s104_s20 }
  0x69   :  { %p1527_p7 = scmp.lt.u32.totalorder %s1523_s29, %s1852_s9 }
  0x6b   :  { %p1529_p8 = pnand %p1527_p7, %p1524_p6 }
  0x6d   :  { %1532 = shalt.err (!%p1529_p8)
}
  0x6e   :  { %s1533_s27 = scalar_lea.vmem %s105_s20, 1024  ;;  %p1538_p10 = scmp.lt.s32.totalorder %s105_s20, %s105_s20 }
  0x6f   :  { %p1534_p9 = scmp.ne.s32.totalorder %s105_s20, %s1533_s27  ;;  %p1539_p11 = scmp.lt.s32.totalorder %s1533_s27, %s1533_s27 }
  0x71   :  { %p1540_p12 = por %p1539_p11, %p1538_p10 }
  0x73   :  { %p1541_p13 = pnand %p1540_p12, %p1534_p9 }
  0x75   :  { %1544 = shalt.err (!%p1541_p13)
}
  0x76   :  { %110 = dma.hbm_to_vmem [thread:$0]  %s1852_s9, 1024, %s105_s20, [#allocation14], %s1585_s13, %s1585_s13, %s1586_s21  }
  0x77   :  { %1567 = dma.done.wait [#allocation5], 512  }
  0x78   :  { %1568 = vsyncadd [#allocation5], 4294966784 }
  0x79   :  { %1569 = dma.done.wait [#allocation8], 1536  }
  0x7a   :  { %1570 = vsyncadd [#allocation8], 4294965760 }
  0x7b   :  { %1571 = dma.done.wait [#allocation11], 5120  }
  0x7c   :  { %1572 = vsyncadd [#allocation11], 4294962176 }
  0x7d   :  { %1573 = dma.done.wait [#allocation14], 2048  }
  0x7e   :  { %1574 = vsyncadd [#allocation14], 4294965248  ;;  %vm139_vm0 = vcmask 257024   ;;  %v1590_v0 = vmov 0   ;;  %v1591_v1 = vmov 0.0   ;;  %vm151_vm1 = vcmask 261120  }
  0x7f   :  { %333 = vmatprep.mubr.bf16.mxu0 %v1590_v0  ;;  %374 = vmatprep.mubr.bf16.mxu1 %v1590_v0  ;;  %140 = vst.msk [vmem:[#allocation2] sm:$0xf] %vm139_vm0, %v1591_v1  ;;  %141 = vst.msk [vmem:[#allocation3] sm:$0xf] %vm139_vm0, %v1591_v1  ;;  %v1319_v2 = vld [vmem:[#allocation10 + $0x4] ss:$16 sps:$4 sm:$0xff]  }
  0x80   :  { %v1321_v3 = vld [vmem:[#allocation10] ss:$16 sps:$4 sm:$0xff]   ;;  %301 = vmatprep.subr.bf16.mxu0 %v1319_v2  ;;  %v1322_v4 = vld [vmem:[#allocation10 + $0xc] ss:$16 sps:$4 sm:$0xff]   ;;  %v1324_v5 = vld [vmem:[#allocation10 + $0x8] ss:$16 sps:$4 sm:$0xff]  }
  0x81   :  { %302 = vmatpush1.bf16.msra.mxu0 %v1321_v3  ;;  %v1325_v6 = vld [vmem:[#allocation10 + $0x24] ss:$16 sps:$4 sm:$0xff]   ;;  %v1327_v7 = vld [vmem:[#allocation10 + $0x20] ss:$16 sps:$4 sm:$0xff]   ;;  %342 = vmatprep.subr.bf16.mxu1 %v1322_v4  ;;  %v1328_v8 = vld [vmem:[#allocation10 + $0x2c] ss:$16 sps:$4 sm:$0xff]  }
  0x82   :  { %343 = vmatpush1.bf16.msra.mxu1 %v1324_v5  ;;  %303 = vmatprep.subr.bf16.mxu0 %v1325_v6  ;;  %v1330_v9 = vld [vmem:[#allocation10 + $0x28] ss:$16 sps:$4 sm:$0xff]   ;;  %v1333_v10 = vld [vmem:[#allocation9 + $0x4] ss:$16 sps:$4 sm:$0xff]   ;;  %v1336_v24 = vld [vmem:[#allocation9 + $0xc] ss:$16 sps:$4 sm:$0xff]  }
  0x83   :  { %344 = vmatprep.subr.bf16.mxu1 %v1328_v8  ;;  %v146_v11 = vld [vmem:[#allocation7] sm:$0xff]  ;;  %v147_v12 = vld [vmem:[#allocation7 + $0x8] sm:$0xff]  ;;  %v148_v13 = vld [vmem:[#allocation7 + $0x10] sm:$0xff]  ;;  %vm184_vm2 = vcmask 1041409   ;;  %vm186_vm3 = vcmask 1042434   ;;  %vm188_vm4 = vcmask 1043459  }
  0x84   :  { %v149_v14 = vld [vmem:[#allocation7 + $0x18] sm:$0xff]  ;;  %v195_v15 = vsel %vm151_vm1, %v146_v11, 0.0  ;;  %v202_v17 = vsel %vm151_vm1, %v147_v12, 0.0  ;;  %v209_v18 = vsel %vm151_vm1, %v148_v13, 0.0  ;;  %v142_v32 = vld [vmem:[#allocation4] sm:$0xff]  ;;  %v143_v33 = vld [vmem:[#allocation4 + $0x8] sm:$0xff] }
  0x85   :  { %304 = vmatpush1.bf16.msra.mxu0 %v1327_v7  ;;  %v196_v16 = vrot.slane %v195_v15, 4  ;;  %v216_v19 = vsel %vm151_vm1, %v149_v14, 0.0  ;;  %v203_v20 = vrot.slane %v202_v17, 4  ;;  %v210_v21 = vrot.slane %v209_v18, 4  ;;  %v144_v34 = vld [vmem:[#allocation4 + $0x10] sm:$0xff]  ;;  %v145_v36 = vld [vmem:[#allocation4 + $0x18] sm:$0xff] }
  0x86   :  { %426 = vmatprep.subr.bf16.mxu0 %v1333_v10  ;;  %345 = vmatpush1.bf16.msra.mxu1 %v1330_v9  ;;  %v217_v22 = vrot.slane %v216_v19, 4  ;;  %v152_v37 = vsel %vm151_vm1, %v142_v32, 0.0  ;;  %v159_v38 = vsel %vm151_vm1, %v143_v33, 0.0  ;;  %v166_v39 = vsel %vm151_vm1, %v144_v34, 0.0  ;;  %v194_v63 = vld [vmem:[#allocation3] sm:$0xf] }
  0x87   :  { %v197_v23 = vadd.f32 %v196_v16, %v195_v15  ;;  %v204_v25 = vadd.f32 %v203_v20, %v202_v17  ;;  %v211_v26 = vadd.f32 %v210_v21, %v209_v18  ;;  %467 = vmatprep.subr.bf16.mxu1 %v1336_v24  ;;  %v153_v43 = vrot.slane %v152_v37, 4  ;;  %v150_v18 = vld [vmem:[#allocation2] sm:$0xf]  ;;  %v1331_v24 = vld [vmem:[#allocation9] ss:$16 sps:$4 sm:$0xff]   ;;  %s1593_s17 = smov [#allocation16]  }
  0x88   :  { %v218_v27 = vadd.f32 %v217_v22, %v216_v19  ;;  %v160_v45 = vrot.slane %v159_v38, 4  ;;  %v167_v46 = vrot.slane %v166_v39, 4  ;;  %v173_v47 = vsel %vm151_vm1, %v145_v36, 0.0  ;;  %v1340_v32 = vld [vmem:[#allocation9 + $0x28] ss:$16 sps:$4 sm:$0xff]   ;;  %v1343_v33 = vld [vmem:[#allocation12 + $0x40] sm:$0xff]  }
  0x89   :  { %v198_v28 = vrot.slane %v197_v23, 2  ;;  %v205_v29 = vrot.slane %v204_v25, 2  ;;  %v212_v30 = vrot.slane %v211_v26, 2  ;;  %v154_v51 = vadd.f32 %v153_v43, %v152_v37  ;;  %v1344_v34 = vld [vmem:[#allocation12 + $0xc0] sm:$0xff]   ;;  %v1350_v43 = vld [vmem:[#allocation12 + $0x88] sm:$0xff]   ;;  %s1117_s7 = sshll.u32 %s1593_s17, 4  ;;  %s1118_s7 = int_to_ptr.vmem [resolvable:$true] %s1117_s7 }
  0x8a   :  { %v219_v31 = vrot.slane %v218_v27, 2  ;;  %v161_v53 = vadd.f32 %v160_v45, %v159_v38  ;;  %v168_v54 = vadd.f32 %v167_v46, %v166_v39  ;;  %v174_v55 = vrot.slane %v173_v47, 4  ;;  %v1345_v37 = vld [vmem:[#allocation12] sm:$0xff]   ;;  %v1347_v39 = vld [vmem:[#allocation12 + $0x48] sm:$0xff]   ;;  %v1352_v45 = vld [vmem:[#allocation12 + $0xd0] sm:$0xff]   ;;  %p1550_p1 = scmp.lt.s32.totalorder %s1118_s7, %s1118_s7 }
  0x8b   :  { %v199_v35 = vadd.f32 %v198_v28, %v197_v23  ;;  %v206_v40 = vadd.f32 %v205_v29, %v204_v25  ;;  %v213_v41 = vadd.f32 %v212_v30, %v211_v26  ;;  %v155_v59 = vrot.slane %v154_v51, 2  ;;  %v1334_v26 = vld [vmem:[#allocation9 + $0x8] ss:$16 sps:$4 sm:$0xff]   ;;  %v1339_v28 = vld [vmem:[#allocation9 + $0x24] ss:$16 sps:$4 sm:$0xff]  }
  0x8c   :  { %v220_v42 = vadd.f32 %v219_v31, %v218_v27  ;;  %v162_v60 = vrot.slane %v161_v53, 2  ;;  %v169_v61 = vrot.slane %v168_v54, 2  ;;  %v175_v62 = vadd.f32 %v174_v55, %v173_v47  ;;  %v1342_v29 = vld [vmem:[#allocation9 + $0x2c] ss:$16 sps:$4 sm:$0xff]   ;;  %v1337_v31 = vld [vmem:[#allocation9 + $0x20] ss:$16 sps:$4 sm:$0xff]  }
  0x8d   :  { %v200_v44 = vrot.slane %v199_v35, 1  ;;  %v207_v48 = vrot.slane %v206_v40, 1  ;;  %v214_v49 = vrot.slane %v213_v41, 1  ;;  %v156_v3 = vadd.f32 %v155_v59, %v154_v51  ;;  %v1346_v38 = vld [vmem:[#allocation12 + $0x80] sm:$0xff]   ;;  %v1354_v46 = vld [vmem:[#allocation12 + $0x90] sm:$0xff]   ;;  %v1355_v47 = vld [vmem:[#allocation12 + $0x58] sm:$0xff]  }
  0x8e   :  { %v221_v50 = vrot.slane %v220_v42, 1  ;;  %v163_v5 = vadd.f32 %v162_v60, %v161_v53  ;;  %v170_v6 = vadd.f32 %v169_v61, %v168_v54  ;;  %v176_v7 = vrot.slane %v175_v62, 2  ;;  %v1359_v51 = vld [vmem:[#allocation12 + $0x60] sm:$0xff]   ;;  %v1363_v55 = vld [vmem:[#allocation12 + $0x68] sm:$0xff]   ;;  %v1367_v59 = vld [vmem:[#allocation12 + $0x70] sm:$0xff]  }
  0x8f   :  { %v201_v52 = vadd.f32 %v200_v44, %v199_v35  ;;  %v208_v56 = vadd.f32 %v207_v48, %v206_v40  ;;  %v215_v57 = vadd.f32 %v214_v49, %v213_v41  ;;  %v157_v9 = vrot.slane %v156_v3, 1  ;;  %v1348_v40 = vld [vmem:[#allocation12 + $0xc8] sm:$0xff]   ;;  %v1351_v44 = vld [vmem:[#allocation12 + $0x50] sm:$0xff]   ;;  %v1356_v48 = vld [vmem:[#allocation12 + $0xd8] sm:$0xff]  }
  0x90   :  { %v222_v58 = vadd.f32 %v221_v50, %v220_v42  ;;  %v164_v11 = vrot.slane %v163_v5, 1  ;;  %v171_v12 = vrot.slane %v170_v6, 1  ;;  %v177_v13 = vadd.f32 %v176_v7, %v175_v62  ;;  %v1349_v42 = vld [vmem:[#allocation12 + $0x8] sm:$0xff]   ;;  %v1357_v49 = vld [vmem:[#allocation12 + $0x18] sm:$0xff]   ;;  %v1361_v53 = vld [vmem:[#allocation12 + $0x20] sm:$0xff]  }
  0x91   :  { %v227_v2 = vsel %vm184_vm2, %v208_v56, %v201_v52  ;;  %v158_v14 = vadd.f32 %v157_v9, %v156_v3  ;;  %v1358_v50 = vld [vmem:[#allocation12 + $0x98] sm:$0xff]   ;;  %v1360_v52 = vld [vmem:[#allocation12 + $0xe0] sm:$0xff]   ;;  %v1364_v56 = vld [vmem:[#allocation12 + $0xe8] sm:$0xff]   ;;  %vm1592_vm5 = vmmov 0  }
  0x92   :  { %v228_v4 = vsel %vm186_vm3, %v215_v57, %v227_v2  ;;  %v165_v15 = vadd.f32 %v164_v11, %v163_v5  ;;  %v172_v16 = vadd.f32 %v171_v12, %v170_v6  ;;  %v178_v17 = vrot.slane %v177_v13, 1  ;;  %v1362_v54 = vld [vmem:[#allocation12 + $0xa0] sm:$0xff]   ;;  %v1365_v57 = vld [vmem:[#allocation12 + $0x28] sm:$0xff]   ;;  %v1368_v60 = vld [vmem:[#allocation12 + $0xf0] sm:$0xff]  }
  0x93   :  { %v229_v8 = vsel %vm188_vm4, %v222_v58, %v228_v4  ;;  %v1366_v58 = vld [vmem:[#allocation12 + $0xa8] sm:$0xff]   ;;  %v1369_v61 = vld [vmem:[#allocation12 + $0x30] sm:$0xff]   ;;  %v1372_v2 = vld [vmem:[#allocation12 + $0xf8] sm:$0xff]   ;;  %v510_v5 = vlaneseq }
  0x94   :  { %v231_v10 = vadd.f32 %v229_v8, %v194_v63  ;;  %v179_v19 = vadd.f32 %v178_v17, %v177_v13  ;;  %v185_v20 = vsel %vm184_vm2, %v165_v15, %v158_v14  ;;  %v1370_v62 = vld [vmem:[#allocation12 + $0xb0] sm:$0xff]   ;;  %v1371_v63 = vld [vmem:[#allocation12 + $0x78] sm:$0xff]  }
  0x95   :  { %v187_v21 = vsel %vm186_vm3, %v172_v16, %v185_v20  ;;  %v1373_v3 = vld [vmem:[#allocation12 + $0x38] sm:$0xff]   ;;  %v511_v6 = vshrl.u32 %v510_v5, 7 }
  0x96   :  { %232 = vst.msk [vmem:[#allocation3] sm:$0xf] %vm139_vm0, %v231_v10  ;;  %v189_v22 = vsel %vm188_vm4, %v179_v19, %v187_v21  ;;  %v1374_v4 = vld [vmem:[#allocation12 + $0xb8] sm:$0xff]  }
  0x97   :  { %v191_v23 = vadd.f32 %v189_v22, %v150_v18  ;;  %v512_v15 = vsub.s32 0, %v511_v6  ;;  %v520_v16 = vsub.s32 2, %v511_v6  ;;  %v508_v17 = vld [vmem:[%s1847_s4] sm:$0xf]  ;;  %v516_v18 = vsub.s32 1, %v511_v6 }
  0x98   :  { %v524_v19 = vsub.s32 3, %v511_v6 }
  0x99   :  { %193 = vst.msk [vmem:[#allocation2] sm:$0xf] %vm139_vm0, %v191_v23  ;;  %v513_v20 = vrot.slane %v508_v17, %v512_v15  ;;  %v521_v21 = vrot.slane %v508_v17, %v520_v16  ;;  %v1182_v15 = vld [vmem:[%s1851_s8] ss:$0 sm:$0xff]  ;;  %s1545_s8 = scalar_lea.vmem %s1118_s7, 64 }
  0x9a   :  { %p1546_p0 = scmp.ne.s32.totalorder %s1118_s7, %s1545_s8  ;;  %p1551_p2 = scmp.lt.s32.totalorder %s1545_s8, %s1545_s8 }
  0x9c   :  { %p1552_p3 = por %p1551_p2, %p1550_p1 }
  0x9d   :  { %v239_v25 = vld [vmem:[#allocation3] sm:$0xf] }
  0x9e   :  { %v240_v27 = vmul.f32 0.125, %v239_v25  ;;  %v525_v25 = vrot.slane %v508_v17, %v524_v19  ;;  %p1553_p4 = pnand %p1552_p3, %p1546_p0 }
  0xa0   :  { %v241_v30 = vpack.c.bf16 %v240_v27, %v240_v27  ;;  %v236_v35 = vld [vmem:[#allocation2] sm:$0xf] }
  0xa1   :  { %v237_v36 = vmul.f32 0.125, %v236_v35 }
  0xa2   :  { %1137 = vmatmul.mubr.msk.bf16.vlgmr.msra.gmra.mrb[0].mxu0 %vm151_vm1, %v241_v30  ;;  %1138 = vmatmul.mubr.msk.bf16.vlgmr.msra.gmra.mrb[0].mxu1 %vm151_vm1, %v241_v30 }
  0xa3   :  { %427 = vmatpush1.bf16.msra.mxu0 %v1331_v24  ;;  %468 = vmatpush1.bf16.msra.mxu1 %v1334_v26  ;;  %v238_v41 = vpack.c.bf16 %v237_v36, %v237_v36  ;;  %v517_v24 = vrot.slane %v508_v17, %v516_v18 }
  0xa4   :  { %428 = vmatprep.subr.bf16.mxu0 %v1339_v28  ;;  %469 = vmatprep.subr.bf16.mxu1 %v1342_v29 }
  0xa5   :  { %458 = vmatprep.mubr.bf16.mxu0 %v1590_v0  ;;  %499 = vmatprep.mubr.bf16.mxu1 %v1590_v0  ;;  %v1353_v0 = vld [vmem:[#allocation12 + $0x10] sm:$0xff]  }
  0xa7   :  { %429 = vmatpush1.bf16.msra.mxu0 %v1337_v31  ;;  %470 = vmatpush1.bf16.msra.mxu1 %v1340_v32 }
  0xa8   :  { %1200 = vmatprep.subr.bf16.mxu0 %v1343_v33  ;;  %1222 = vmatprep.subr.bf16.mxu1 %v1344_v34 }
  0xaa   :  { %1147 = vmatmul.mubr.msk.bf16.vlgmr.msra.gmra.mrb[4].mxu0 %vm151_vm1, %v238_v41  ;;  %1148 = vmatmul.mubr.msk.bf16.vlgmr.msra.gmra.mrb[4].mxu1 %vm151_vm1, %v238_v41 }
  0xab   :  { %1201 = vmatpush3.bf16.msra.mxu0 %v1345_v37  ;;  %1223 = vmatpush3.bf16.msra.mxu1 %v1346_v38 }
  0xac   :  { %1202 = vmatprep.subr.bf16.mxu0 %v1347_v39  ;;  %1224 = vmatprep.subr.bf16.mxu1 %v1348_v40 }
  0xaf   :  { %1203 = vmatpush3.bf16.msra.mxu0 %v1349_v42  ;;  %1225 = vmatpush3.bf16.msra.mxu1 %v1350_v43 }
  0xb0   :  { %1204 = vmatprep.subr.bf16.mxu0 %v1351_v44  ;;  %1226 = vmatprep.subr.bf16.mxu1 %v1352_v45 }
  0xb3   :  { %1205 = vmatpush3.bf16.msra.mxu0 %v1353_v0  ;;  %1227 = vmatpush3.bf16.msra.mxu1 %v1354_v46  ;;  %v1375_v0 = vld [vmem:[#allocation13] sm:$0xff]  }
  0xb4   :  { %1206 = vmatprep.subr.bf16.mxu0 %v1355_v47  ;;  %1228 = vmatprep.subr.bf16.mxu1 %v1356_v48  ;;  %v1376_v48 = vld [vmem:[#allocation13 + $0x8] sm:$0xff]  }
  0xb7   :  { %1207 = vmatpush3.bf16.msra.mxu0 %v1357_v49  ;;  %1229 = vmatpush3.bf16.msra.mxu1 %v1358_v50  ;;  %v1377_v49 = vld [vmem:[#allocation13 + $0x10] sm:$0xff]   ;;  %v1378_v50 = vld [vmem:[#allocation13 + $0x18] sm:$0xff]  }
  0xb8   :  { %1208 = vmatprep.subr.bf16.mxu0 %v1359_v51  ;;  %1230 = vmatprep.subr.bf16.mxu1 %v1360_v52  ;;  %v1379_v51 = vld [vmem:[#allocation13 + $0x20] sm:$0xff]   ;;  %v1380_v52 = vld [vmem:[#allocation13 + $0x28] sm:$0xff]  }
  0xbb   :  { %1209 = vmatpush3.bf16.msra.mxu0 %v1361_v53  ;;  %1231 = vmatpush3.bf16.msra.mxu1 %v1362_v54  ;;  %v1381_v53 = vld [vmem:[#allocation13 + $0x30] sm:$0xff]   ;;  %v1382_v54 = vld [vmem:[#allocation13 + $0x38] sm:$0xff]  }
  0xbc   :  { %1210 = vmatprep.subr.bf16.mxu0 %v1363_v55  ;;  %1232 = vmatprep.subr.bf16.mxu1 %v1364_v56  ;;  %v1383_v55 = vld [vmem:[#allocation15] sm:$0xff]   ;;  %v1384_v56 = vld [vmem:[#allocation15 + $0x8] sm:$0xff]  }
  0xbf   :  { %1211 = vmatpush3.bf16.msra.mxu0 %v1365_v57  ;;  %1233 = vmatpush3.bf16.msra.mxu1 %v1366_v58  ;;  %v1385_v57 = vld [vmem:[#allocation15 + $0x10] sm:$0xff]   ;;  %v1386_v58 = vld [vmem:[#allocation15 + $0x18] sm:$0xff]  }
  0xc0   :  { %1212 = vmatprep.subr.bf16.mxu0 %v1367_v59  ;;  %1234 = vmatprep.subr.bf16.mxu1 %v1368_v60  ;;  %v1387_v59 = vld [vmem:[#allocation15 + $0x20] sm:$0xff]   ;;  %v1388_v60 = vld [vmem:[#allocation15 + $0x28] sm:$0xff]  }
  0xc3   :  { %1213 = vmatpush3.bf16.msra.mxu0 %v1369_v61  ;;  %1235 = vmatpush3.bf16.msra.mxu1 %v1370_v62 }
  0xc4   :  { %1214 = vmatprep.subr.bf16.mxu0 %v1371_v63  ;;  %1236 = vmatprep.subr.bf16.mxu1 %v1372_v2  ;;  %v1149_v63 = vld [vmem:[%s1849_s6] ss:$0 sm:$0xff] }
  0xc7   :  { %1215 = vmatpush3.bf16.msra.mxu0 %v1373_v3  ;;  %1237 = vmatpush3.bf16.msra.mxu1 %v1374_v4 }
  0xc8   :  { %1262 = vmatprep.subr.bf16.mxu0 %v1591_v1  ;;  %1282 = vmatprep.subr.bf16.mxu1 %v1591_v1 }
 0x175   :  { %v335_v7 = vpop.f32.mrb[0].mxu0  ;;  %v376_v8 = vpop.f32.mrb[0].mxu1 }
 0x176   :  { %v337_v9 = vpop.f32.mrb[1].mxu0  ;;  %v378_v10 = vpop.f32.mrb[1].mxu1 }
 0x177   :  { %v339_v11 = vpop.f32.mrb[2].mxu0  ;;  %v380_v12 = vpop.f32.mrb[2].mxu1 }
 0x178   :  { %v340_v13 = vpop.f32.mrb[3].mxu0  ;;  %v381_v14 = vpop.f32.mrb[3].mxu1 }
 0x179   :  { %v1389_v13 = vld [vmem:[#allocation15 + $0x30] sm:$0xff]   ;;  %v1390_v14 = vld [vmem:[#allocation15 + $0x38] sm:$0xff]  }
 0x17d   :  { %v460_v22 = vpop.f32.mrb[4].mxu0  ;;  %v501_v23 = vpop.f32.mrb[4].mxu1 }
 0x17e   :  { %v461_v26 = vadd.f32 %v460_v22, %v335_v7  ;;  %v502_v27 = vadd.f32 %v501_v23, %v376_v8  ;;  %v462_v28 = vpop.f32.mrb[5].mxu0  ;;  %v503_v29 = vpop.f32.mrb[5].mxu1  ;;  %v1191_v23 = vld [vmem:[%s1853_s10] ss:$0 sm:$0xff] }
 0x17f   :  { %v463_v30 = vadd.f32 %v462_v28, %v337_v9  ;;  %v504_v31 = vadd.f32 %v503_v29, %v378_v10  ;;  %v464_v32 = vpop.f32.mrb[6].mxu0  ;;  %v505_v33 = vpop.f32.mrb[6].mxu1 }
 0x180   :  { %v530_v34 = vadd.f32 %v513_v20, %v461_v26  ;;  %v532_v35 = vadd.f32 %v521_v21, %v502_v27  ;;  %v465_v36 = vpop.f32.mrb[7].mxu0  ;;  %v506_v37 = vpop.f32.mrb[7].mxu1 }
 0x181   :  { %v531_v38 = vadd.f32 %v517_v24, %v463_v30  ;;  %v533_v39 = vadd.f32 %v525_v25, %v504_v31 }
 0x182   :  { %v534_v40 = vmax.f32 %v530_v34, 0.0  ;;  %v536_v41 = vmax.f32 %v532_v35, 0.0 }
 0x183   :  { %v535_v42 = vmax.f32 %v531_v38, 0.0  ;;  %v537_v43 = vmax.f32 %v533_v39, 0.0 }
 0x184   :  { %v538_v46 = vpack.c.bf16 %v534_v40, %v534_v40  ;;  %v540_v47 = vpack.c.bf16 %v536_v41, %v536_v41 }
 0x185   :  { %v539_v44 = vpack.c.bf16 %v535_v42, %v535_v42  ;;  %v541_v45 = vpack.c.bf16 %v537_v43, %v537_v43 }
 0x187   :  { %837 = vmatprep.mubr.bf16.mxu0 %v539_v44  ;;  %877 = vmatprep.mubr.bf16.mxu1 %v541_v45 }
 0x188   :  { %838 = vmatmul.mubr.bf16.vlgmr.msra.gmra.mrb[8].mxu0 %v538_v46  ;;  %878 = vmatmul.mubr.bf16.vlgmr.msra.gmra.mrb[8].mxu1 %v540_v47 }
 0x189   :  { %1263 = vmatpush3.bf16.msra.mxu0 %v1375_v0  ;;  %1278 = vmatprep.mubr.msk.bf16.mxu0 %vm1592_vm5, %v1591_v1 }
 0x18a   :  { %1264 = vmatprep.subr.bf16.mxu0 %v1591_v1  ;;  %1298 = vmatprep.mubr.msk.bf16.mxu1 %vm1592_vm5, %v1591_v1 }
 0x18b   :  { %1283 = vmatpush3.bf16.msra.mxu1 %v1383_v55 }
 0x18c   :  { %1284 = vmatprep.subr.bf16.mxu1 %v1591_v1 }
 0x18d   :  { %1265 = vmatpush3.bf16.msra.mxu0 %v1376_v48 }
 0x18e   :  { %1266 = vmatprep.subr.bf16.mxu0 %v1591_v1 }
 0x18f   :  { %1285 = vmatpush3.bf16.msra.mxu1 %v1384_v56 }
 0x190   :  { %1286 = vmatprep.subr.bf16.mxu1 %v1591_v1 }
 0x191   :  { %1267 = vmatpush3.bf16.msra.mxu0 %v1377_v49 }
 0x192   :  { %1268 = vmatprep.subr.bf16.mxu0 %v1591_v1 }
 0x193   :  { %1287 = vmatpush3.bf16.msra.mxu1 %v1385_v57 }
 0x194   :  { %1288 = vmatprep.subr.bf16.mxu1 %v1591_v1 }
 0x195   :  { %1269 = vmatpush3.bf16.msra.mxu0 %v1378_v50 }
 0x196   :  { %1270 = vmatprep.subr.bf16.mxu0 %v1591_v1 }
 0x197   :  { %1289 = vmatpush3.bf16.msra.mxu1 %v1386_v58 }
 0x198   :  { %1290 = vmatprep.subr.bf16.mxu1 %v1591_v1 }
 0x199   :  { %1271 = vmatpush3.bf16.msra.mxu0 %v1379_v51 }
 0x19a   :  { %1272 = vmatprep.subr.bf16.mxu0 %v1591_v1 }
 0x19b   :  { %1291 = vmatpush3.bf16.msra.mxu1 %v1387_v59 }
 0x19c   :  { %1292 = vmatprep.subr.bf16.mxu1 %v1591_v1 }
 0x19d   :  { %1273 = vmatpush3.bf16.msra.mxu0 %v1380_v52 }
 0x19e   :  { %1274 = vmatprep.subr.bf16.mxu0 %v1591_v1 }
 0x19f   :  { %1293 = vmatpush3.bf16.msra.mxu1 %v1388_v60 }
 0x1a0   :  { %1294 = vmatprep.subr.bf16.mxu1 %v1591_v1 }
 0x1a1   :  { %1275 = vmatpush3.bf16.msra.mxu0 %v1381_v53 }
 0x1a2   :  { %1276 = vmatprep.subr.bf16.mxu0 %v1591_v1 }
 0x1a3   :  { %1295 = vmatpush3.bf16.msra.mxu1 %v1389_v13 }
 0x1a4   :  { %1296 = vmatprep.subr.bf16.mxu1 %v1591_v1 }
 0x1a5   :  { %1277 = vmatpush3.bf16.msra.mxu0 %v1382_v54 }
 0x1a7   :  { %1297 = vmatpush3.bf16.msra.mxu1 %v1390_v14 }
 0x25b   :  { %v1216_v61 = vpop.f32.mrb[8].mxu0  ;;  %v1238_v62 = vpop.f32.mrb[8].mxu1 }
 0x25c   :  { %v1217_v2 = vpop.f32.mrb[9].mxu0  ;;  %v1239_v3 = vpop.f32.mrb[9].mxu1 }
 0x25d   :  { %v1218_v4 = vadd.f32 %v1217_v2, %v1216_v61  ;;  %v1240_v5 = vadd.f32 %v1239_v3, %v1238_v62  ;;  %v1219_v6 = vpop.f32.mrb[10].mxu0  ;;  %v1241_v7 = vpop.f32.mrb[10].mxu1 }
 0x25e   :  { %v1220_v8 = vpop.f32.mrb[11].mxu0  ;;  %v1242_v9 = vpop.f32.mrb[11].mxu1 }
 0x25f   :  { %v840_v10 = vadd.f32 %v1218_v4, %v1149_v63 }
 0x261   :  { %v880_v11 = vadd.f32 %v1240_v5, %v840_v10 }
 0x263   :  { %v885_v12 = vpack.c.bf16 %v880_v11, %v880_v11 }
 0x265   :  { %1279 = vmatmul.mubr.bf16.vlgmr.msra.gmra.mrb[12].mxu0 %v885_v12 }
 0x338   :  { %v991_v16 = vpop.f32.mrb[12].mxu0 }
 0x339   :  { %v992_v17 = vadd.f32 %v1182_v15, %v991_v16  ;;  %v1280_v18 = vpop.f32.mrb[13].mxu0 }
 0x33a   :  { %v994_v19 = vpop.f32.mrb[14].mxu0 }
 0x33b   :  { %v997_v20 = vmax.f32 %v992_v17, 0.0  ;;  %v1281_v21 = vpop.f32.mrb[15].mxu0 }
 0x33d   :  { %v998_v22 = vpack.c.bf16 %v997_v20, %v997_v20 }
 0x33f   :  { %1299 = vmatmul.mubr.bf16.vlgmr.msra.gmra.mrb[12].mxu1 %v998_v22 }
 0x412   :  { %v1104_v1 = vpop.f32.mrb[12].mxu1 }
 0x413   :  { %v1105_v24 = vadd.f32 %v1191_v23, %v1104_v1  ;;  %v1300_v25 = vpop.f32.mrb[13].mxu1 }
 0x414   :  { %v1107_v26 = vpop.f32.mrb[14].mxu1 }
 0x415   :  { %1110 = vst [vmem:[#allocation16] sm:$0xf] %v1105_v24  ;;  %v1301_v27 = vpop.f32.mrb[15].mxu1 }
 0x416   :  { %1556 = shalt.err (!%p1553_p4)
}
 0x417   :  { %s1557_s10 = scalar_lea.hbm %s1854_s11, 64 }
 0x418   :  { %p1558_p5 = scmp.ne.s32.totalorder %s1854_s11, %s1557_s10  ;;  %p1561_p6 = scmp.lt.u32.totalorder %s1557_s10, %s1854_s11 }
 0x41a   :  { %p1563_p7 = pnand %p1561_p6, %p1558_p5 }
 0x41c   :  { %1566 = shalt.err (!%p1563_p7)
}
 0x41d   :  { %1120 = dma.vmem_to_hbm [thread:$0]  %s1118_s7, 64, %s1854_s11, [#allocation6]  }
 0x41e   :  { %1575 = dma.done.wait [#allocation6], 64  }
 0x41f   :  { %1576 = vsyncadd [#allocation6], 4294967232 }
 0x420   :  { %1124 = vsyncpa [#allocation5], 1 }
 0x421   :  { %1125 = vsyncpa [#allocation8], 1 }
 0x422   :  { %1126 = vsyncpa [#allocation11], 1 }
 0x423   :  { %1127 = vsyncpa [#allocation14], 1 }
 0x424   :  { %1128 = vsyncpa [#allocation6], 1 }

</bundles_post_ra>
